<compile_context>
chip_gen: v7x
topology: tpu7x:2x2x1
jax: 0.10.0
libtpu: 0.0.40
codegen_flags: <defaults>
</compile_context>

<pallas_src>
import functools

import jax
import jax.numpy as jnp
from jax.experimental import pallas as pl
from jax.experimental.pallas import tpu as pltpu

_LANE = 128
_SUBLANE = 8
_TARGET_BLOCK_ROWS = 4096        # 4096 x 128 x 4B = 2 MiB per f32 input block
_CHUNK_ROWS = 512                # inner accumulation chunk (256 KiB f32)
_MAX_SHARDS = 2                  # v7x has 2 TensorCores per chip
_MIN_BLOCKS_FOR_SHARDING = 8     # avoid clamped-duplicate traffic on small n
_SMALL_N = 64 * 1024             # below this, a fused XLA expression wins
_LOG_CLAMP = -100.0              # nn.BCELoss clamps log terms at -100


def _bce_terms(yh, y):
    """Per-element (un-negated) BCE term and valid-count, PyTorch-clamped."""
    yh = yh.astype(jnp.float32)
    y = y.astype(jnp.float32)
    valid = y > -0.5
    log_yh = jnp.maximum(jnp.log(yh), _LOG_CLAMP)
    log_1m = jnp.maximum(jnp.log(1.0 - yh), _LOG_CLAMP)
    # y*log(yh) + (1-y)*log(1-yh), factored to save VALU ops per element.
    term = y * (log_yh - log_1m) + log_1m
    # True selects (not arithmetic masking) so NaN/Inf from invalid / garbage
    # elements never reaches the accumulators.
    term = jnp.where(valid, term, 0.0)
    cnt = jnp.where(valid, 1.0, 0.0)
    return term, cnt


def _masked_bce_sums_jax(yh, y):
    """(sum of un-negated BCE terms, valid count) as plain fused JAX."""
    term, cnt = _bce_terms(yh, y)
    return jnp.sum(term), jnp.sum(cnt)


def _bce_kernel(yh_ref, y_ref, out_ref, *, block_rows, chunk_rows, rows,
                blocks_per_shard, need_row_mask):
    c = pl.program_id(0)                 # shard ("parallel" axis)
    i = pl.program_id(1)                 # block within shard (reduction axis)

    @pl.when(i == 0)
    def _():
        out_ref[...] = jnp.zeros_like(out_ref)

    num_chunks = block_rows // chunk_rows
    row_start = (c * blocks_per_shard + i) * block_rows   # logical, unclamped

    def accumulate(mask_rows):
        def body(k, carry):
            loss_acc, cnt_acc = carry
            r0 = pl.multiple_of(k * chunk_rows, _SUBLANE)
            yh = yh_ref[pl.ds(r0, chunk_rows), :]
            y = y_ref[pl.ds(r0, chunk_rows), :]
            term, cnt = _bce_terms(yh, y)
            if mask_rows:
                rid = jax.lax.broadcasted_iota(
                    jnp.int32, (chunk_rows, _LANE), 0)
                in_bounds = (row_start + r0 + rid) < rows
                term = jnp.where(in_bounds, term, 0.0)
                cnt = jnp.where(in_bounds, cnt, 0.0)
            t3 = term.reshape(chunk_rows // _SUBLANE, _SUBLANE, _LANE)
            c3 = cnt.reshape(chunk_rows // _SUBLANE, _SUBLANE, _LANE)
            return (loss_acc + jnp.sum(t3, axis=0),
                    cnt_acc + jnp.sum(c3, axis=0))

        zero = jnp.zeros((_SUBLANE, _LANE), jnp.float32)
        loss_acc, cnt_acc = jax.lax.fori_loop(
            0, num_chunks, body, (zero, zero), unroll=True)
        out_ref[0, 0] += loss_acc
        out_ref[0, 1] += cnt_acc

    if need_row_mask:
        # Only the partial tail block and the clamped duplicate block pay for
        # the row-mask work; all full blocks take the cheap path.
        needs_mask = row_start + block_rows > rows

        @pl.when(needs_mask)
        def _():
            accumulate(True)

        @pl.when(jnp.logical_not(needs_mask))
        def _():
            accumulate(False)
    else:
        accumulate(False)

    # Fold the per-shard cross-lane/sublane reduction into the last grid step
    # (XLU slot is free in this VPU/EUP-heavy kernel); the JAX epilogue then
    # only adds 2*num_shards scalars and divides.
    @pl.when(i == blocks_per_shard - 1)
    def _():
        loss_col = jnp.sum(out_ref[0, 0], axis=1, keepdims=True)   # (8,1)
        cnt_col = jnp.sum(out_ref[0, 1], axis=1, keepdims=True)
        loss_tot = jnp.sum(loss_col, axis=0, keepdims=True)        # (1,1)
        cnt_tot = jnp.sum(cnt_col, axis=0, keepdims=True)
        out_ref[0, 0] = jnp.broadcast_to(loss_tot, (_SUBLANE, _LANE))
        out_ref[0, 1] = jnp.broadcast_to(cnt_tot, (_SUBLANE, _LANE))


def _bce_sums_pallas(yh_flat, y_flat):
    """(sum of un-negated BCE terms, valid count) using the Pallas kernel."""
    n = yh_flat.shape[0]
    bulk = n - (n % _LANE)
    if bulk == 0:                       # defensive; callers use the fast path
        return _masked_bce_sums_jax(yh_flat, y_flat)

    if bulk < n:
        # <128-element tail handled in JAX; no full-array pad/concat copy.
        # TODO(synk): a fully zero-copy misaligned path would pass the flat
        # array via memory_space=pl.ANY + manual DMA instead of this slice.
        tail_sum, tail_cnt = _masked_bce_sums_jax(yh_flat[bulk:],
                                                  y_flat[bulk:])
        yh_bulk, y_bulk = yh_flat[:bulk], y_flat[:bulk]
    else:
        tail_sum = tail_cnt = None
        yh_bulk, y_bulk = yh_flat, y_flat

    rows = bulk // _LANE
    yh2 = yh_bulk.reshape(rows, _LANE)
    y2 = y_bulk.reshape(rows, _LANE)

    block_rows = min(_TARGET_BLOCK_ROWS, (rows // _SUBLANE) * _SUBLANE)
    chunk_rows = _CHUNK_ROWS if block_rows % _CHUNK_ROWS == 0 else block_rows
    total_blocks = pl.cdiv(rows, block_rows)
    num_shards = _MAX_SHARDS if total_blocks >= _MIN_BLOCKS_FOR_SHARDING else 1
    blocks_per_shard = pl.cdiv(total_blocks, num_shards)
    last_block = total_blocks - 1
    # Mask needed whenever the grid logically covers more rows than exist
    # (partial tail block and/or clamped duplicate block on the last shard).
    need_row_mask = (num_shards * blocks_per_shard * block_rows) != rows

    def in_index_map(c, i):
        # Clamp logically-out-of-range steps to the last block; consecutive
        # repeats of the same block index skip the re-fetch, and the in-kernel
        # row mask zeroes their contribution.
        return (jnp.minimum(c * blocks_per_shard + i, last_block), 0)

    kernel = functools.partial(
        _bce_kernel,
        block_rows=block_rows,
        chunk_rows=chunk_rows,
        rows=rows,
        blocks_per_shard=blocks_per_shard,
        need_row_mask=need_row_mask,
    )

    # TODO(synk): on v7x, verify the leading "parallel" axis really splits the
    # shards across the two TensorCores; if not, switch to pltpu.CORE_PARALLEL
    # or pl.core_map + pltpu.create_tensorcore_mesh.
    partials = pl.pallas_call(
        kernel,
        out_shape=jax.ShapeDtypeStruct(
            (num_shards, 2, _SUBLANE, _LANE), jnp.float32),
        grid_spec=pltpu.PrefetchScalarGridSpec(
            num_scalar_prefetch=0,
            grid=(num_shards, blocks_per_shard),
            in_specs=[
                pl.BlockSpec((block_rows, _LANE), in_index_map),
                pl.BlockSpec((block_rows, _LANE), in_index_map),
            ],
            out_specs=pl.BlockSpec((1, 2, _SUBLANE, _LANE),
                                   lambda c, i: (c, 0, 0, 0)),
        ),
        compiler_params=pltpu.CompilerParams(
            dimension_semantics=("parallel", "arbitrary"),
            vmem_limit_bytes=32 * 1024 * 1024,
        ),
    )(yh2, y2)

    # Per-shard totals were already reduced in-kernel into slot [:, :, 0, 0].
    totals = jnp.sum(partials[:, :, 0, 0], axis=0)       # (2,)
    term_sum, cnt = totals[0], totals[1]
    if tail_sum is not None:
        term_sum = term_sum + tail_sum
        cnt = cnt + tail_cnt
    return term_sum, cnt


def custom_bce_loss(y_hat, y):
    """Masked BCE loss (mean over elements where y > -0.5). Returns f32 scalar.

    Matches PyTorch: if no element passes the mask the result is NaN.
    """
    yh_flat = jnp.reshape(y_hat, (-1,))
    y_flat = jnp.reshape(y, (-1,))
    n = yh_flat.shape[0]

    if n < _SMALL_N:
        # Tiny inputs: fused XLA elementwise+reduce beats kernel overhead.
        term_sum, cnt = _masked_bce_sums_jax(yh_flat, y_flat)
    else:
        term_sum, cnt = _bce_sums_pallas(yh_flat, y_flat)
    return -(term_sum / cnt)


if __name__ == "__main__":
    key = jax.random.PRNGKey(0)
    k1, k2, k3, k4, k5, k6, k7, k8, k9 = jax.random.split(key, 9)

    def reference(y_hat, y):
        yh_f = y_hat.reshape(-1).astype(jnp.float32)
        y_f = y.reshape(-1).astype(jnp.float32)
        m = y_f > -0.5
        bce = -(y_f * jnp.maximum(jnp.log(yh_f), -100.0)
                + (1.0 - y_f) * jnp.maximum(jnp.log(1.0 - yh_f), -100.0))
        return jnp.sum(jnp.where(m, bce, 0.0)) / jnp.sum(m.astype(jnp.float32))

    # Case 1: small 4-D tensor (typical segmentation-style input).
    shape = (2, 4, 16, 16)
    y_hat = jax.nn.sigmoid(jax.random.normal(k1, shape, dtype=jnp.float32))
    y = jax.random.bernoulli(k2, 0.5, shape).astype(jnp.float32)
    y = jnp.where(jax.random.bernoulli(k3, 0.25, shape), -1.0, y)
    ref = reference(y_hat, y)

    loss = jax.block_until_ready(custom_bce_loss(y_hat, y))     # fast path
    assert jnp.allclose(loss, ref, rtol=1e-4, atol=1e-5), (loss, ref)

    # Same small tensor forced through the Pallas kernel path.
    s, c = _bce_sums_pallas(jnp.reshape(y_hat, (-1,)), jnp.reshape(y, (-1,)))
    loss_k = jax.block_until_ready(-(s / c))
    assert jnp.allclose(loss_k, ref, rtol=1e-4, atol=1e-5), (loss_k, ref)

    # Case 2: odd-sized input exercising the 128-misaligned JAX tail and the
    # partial (masked) last block with chunked in-kernel accumulation.
    n2 = 600_000
    y_hat2 = jax.nn.sigmoid(jax.random.normal(k4, (n2,), dtype=jnp.float32))
    y2 = jax.random.bernoulli(k5, 0.5, (n2,)).astype(jnp.float32)
    y2 = jnp.where(jax.random.bernoulli(k6, 0.25, (n2,)), -1.0, y2)
    loss2 = jax.block_until_ready(custom_bce_loss(y_hat2, y2))
    ref2 = reference(y_hat2, y2)
    assert jnp.allclose(loss2, ref2, rtol=1e-3, atol=1e-6), (loss2, ref2)

    # Case 3: large enough for 2 shards, an odd block count (one clamped
    # duplicate block), a partial tail block, and a misaligned JAX tail.
    n3 = (8 * _TARGET_BLOCK_ROWS + 1000) * _LANE + 77
    y_hat3 = jax.nn.sigmoid(jax.random.normal(k7, (n3,), dtype=jnp.float32))
    y3 = jax.random.bernoulli(k8, 0.5, (n3,)).astype(jnp.float32)
    y3 = jnp.where(jax.random.bernoulli(k9, 0.25, (n3,)), -1.0, y3)
    loss3 = jax.block_until_ready(custom_bce_loss(y_hat3, y3))
    ref3 = reference(y_hat3, y3)
    assert jnp.allclose(loss3, ref3, rtol=1e-3, atol=1e-6), (loss3, ref3)

    print("KERNEL_OK")
</pallas_src>

<mosaic_0001>
module attributes {stable_mosaic.version = 11 : i64} {
  func.func @_bce_kernel(%arg0: i32, %arg1: i32, %arg2: memref<16x128xf32, #tpu.memory_space<vmem>>, %arg3: memref<16x128xf32, #tpu.memory_space<vmem>>, %arg4: memref<1x2x8x128xf32, #tpu.memory_space<vmem>>) attributes {dimension_semantics = [#tpu.dimension_semantics<parallel>, #tpu.dimension_semantics<arbitrary>], iteration_bounds = array<i64: 1, 1>, scalar_prefetch = 0 : i64, scratch_operands = 0 : i64, tpu.core_type = #tpu.core_type<tc>, window_params = [{transform_indices = @transform_0, window_bounds = array<i64: 16, 128>}, {transform_indices = @transform_1, window_bounds = array<i64: 16, 128>}, {transform_indices = @transform_2, window_bounds = array<i64: 1, 2, 8, 128>}]} {
    %c0_i32 = arith.constant 0 : i32
    %0 = arith.cmpi eq, %arg1, %c0_i32 : i32
    %1 = arith.extui %0 : i1 to i32
    %c0_i32_0 = arith.constant 0 : i32
    %2 = arith.cmpi ne, %1, %c0_i32_0 : i32
    scf.if %2 {
      %cst_29 = arith.constant 0.000000e+00 : f32
      %49 = vector.broadcast %cst_29 : f32 to vector<1x2x8x128xf32>
      %c0_30 = arith.constant 0 : index
      %c0_31 = arith.constant 0 : index
      %c0_32 = arith.constant 0 : index
      %c0_33 = arith.constant 0 : index
      %50 = vector.load %arg4[%c0_30, %c0_31, %c0_32, %c0_33] : memref<1x2x8x128xf32, #tpu.memory_space<vmem>>, vector<1x2x8x128xf32>
      tpu.vector_store %arg4[%c0_30, %c0_31, %c0_32, %c0_33], %49 {strides = array<i32>} : memref<1x2x8x128xf32, #tpu.memory_space<vmem>>, vector<1x2x8x128xf32>,
    } else {
    }
    %cst = arith.constant 0.000000e+00 : f32
    %3 = vector.broadcast %cst : f32 to vector<8x128xf32>
    %c0_i32_1 = arith.constant 0 : i32
    %c16_i32 = arith.constant 16 : i32
    %4 = arith.muli %c0_i32_1, %c16_i32 : i32
    %5 = tpu.assume_multiple %4, 8 : i32
    %6 = arith.index_cast %5 : i32 to index
    %c0 = arith.constant 0 : index
    %7 = vector.load %arg2[%6, %c0] : memref<16x128xf32, #tpu.memory_space<vmem>>, vector<16x128xf32>
    %8 = arith.index_cast %5 : i32 to index
    %c0_2 = arith.constant 0 : index
    %9 = vector.load %arg3[%8, %c0_2] : memref<16x128xf32, #tpu.memory_space<vmem>>, vector<16x128xf32>
    %cst_3 = arith.constant -5.000000e-01 : f32
    %10 = vector.broadcast %cst_3 : f32 to vector<16x128xf32>
    %11 = arith.cmpf ogt, %9, %10 : vector<16x128xf32>
    %12 = math.log %7 : vector<16x128xf32>
    %cst_4 = arith.constant -1.000000e+02 : f32
    %13 = vector.broadcast %cst_4 : f32 to vector<16x128xf32>
    %14 = arith.maximumf %12, %13 : vector<16x128xf32>
    %cst_5 = arith.constant 1.000000e+00 : f32
    %15 = vector.broadcast %cst_5 : f32 to vector<16x128xf32>
    %16 = arith.subf %15, %7 : vector<16x128xf32>
    %17 = math.log %16 : vector<16x128xf32>
    %cst_6 = arith.constant -1.000000e+02 : f32
    %18 = vector.broadcast %cst_6 : f32 to vector<16x128xf32>
    %19 = arith.maximumf %17, %18 : vector<16x128xf32>
    %20 = arith.subf %14, %19 : vector<16x128xf32>
    %21 = arith.mulf %9, %20 : vector<16x128xf32>
    %22 = arith.addf %21, %19 : vector<16x128xf32>
    %cst_7 = arith.constant 0.000000e+00 : f32
    %23 = vector.broadcast %cst_7 : f32 to vector<16x128xf32>
    %24 = arith.select %11, %22, %23 : vector<16x128xi1>, vector<16x128xf32>
    %cst_8 = arith.constant 1.000000e+00 : f32
    %cst_9 = arith.constant 0.000000e+00 : f32
    %25 = vector.broadcast %cst_8 : f32 to vector<16x128xf32>
    %26 = vector.broadcast %cst_9 : f32 to vector<16x128xf32>
    %27 = arith.select %11, %25, %26 : vector<16x128xi1>, vector<16x128xf32>
    %28 = vector.shape_cast %24 : vector<16x128xf32> to vector<2x8x128xf32>
    %29 = vector.shape_cast %27 : vector<16x128xf32> to vector<2x8x128xf32>
    %cst_10 = arith.constant dense<0.000000e+00> : vector<8x128xf32>
    %30 = vector.multi_reduction <add>, %28, %cst_10 [0] : vector<2x8x128xf32> to vector<8x128xf32>
    %31 = arith.addf %3, %30 : vector<8x128xf32>
    %cst_11 = arith.constant dense<0.000000e+00> : vector<8x128xf32>
    %32 = vector.multi_reduction <add>, %29, %cst_11 [0] : vector<2x8x128xf32> to vector<8x128xf32>
    %33 = arith.addf %3, %32 : vector<8x128xf32>
    %c1_i32 = arith.constant 1 : i32
    %c0_12 = arith.constant 0 : index
    %c0_13 = arith.constant 0 : index
    %c0_14 = arith.constant 0 : index
    %c0_15 = arith.constant 0 : index
    %34 = vector.load %arg4[%c0_12, %c0_13, %c0_14, %c0_15] : memref<1x2x8x128xf32, #tpu.memory_space<vmem>>, vector<1x1x8x128xf32>
    %35 = vector.shape_cast %34 : vector<1x1x8x128xf32> to vector<8x128xf32>
    %36 = arith.addf %35, %31 : vector<8x128xf32>
    %c0_16 = arith.constant 0 : index
    %c0_17 = arith.constant 0 : index
    %c0_18 = arith.constant 0 : index
    %c0_19 = arith.constant 0 : index
    %37 = vector.load %arg4[%c0_16, %c0_17, %c0_18, %c0_19] : memref<1x2x8x128xf32, #tpu.memory_space<vmem>>, vector<1x1x8x128xf32>
    %38 = vector.shape_cast %37 : vector<1x1x8x128xf32> to vector<8x128xf32>
    %39 = vector.shape_cast %36 : vector<8x128xf32> to vector<1x1x8x128xf32>
    tpu.vector_store %arg4[%c0_16, %c0_17, %c0_18, %c0_19], %39 {strides = array<i32>} : memref<1x2x8x128xf32, #tpu.memory_space<vmem>>, vector<1x1x8x128xf32>,
    %c0_20 = arith.constant 0 : index
    %c1 = arith.constant 1 : index
    %c0_21 = arith.constant 0 : index
    %c0_22 = arith.constant 0 : index
    %40 = vector.load %arg4[%c0_20, %c1, %c0_21, %c0_22] : memref<1x2x8x128xf32, #tpu.memory_space<vmem>>, vector<1x1x8x128xf32>
    %41 = vector.shape_cast %40 : vector<1x1x8x128xf32> to vector<8x128xf32>
    %42 = arith.addf %41, %33 : vector<8x128xf32>
    %c0_23 = arith.constant 0 : index
    %c1_24 = arith.constant 1 : index
    %c0_25 = arith.constant 0 : index
    %c0_26 = arith.constant 0 : index
    %43 = vector.load %arg4[%c0_23, %c1_24, %c0_25, %c0_26] : memref<1x2x8x128xf32, #tpu.memory_space<vmem>>, vector<1x1x8x128xf32>
    %44 = vector.shape_cast %43 : vector<1x1x8x128xf32> to vector<8x128xf32>
    %45 = vector.shape_cast %42 : vector<8x128xf32> to vector<1x1x8x128xf32>
    tpu.vector_store %arg4[%c0_23, %c1_24, %c0_25, %c0_26], %45 {strides = array<i32>} : memref<1x2x8x128xf32, #tpu.memory_space<vmem>>, vector<1x1x8x128xf32>,
    %c0_i32_27 = arith.constant 0 : i32
    %46 = arith.cmpi eq, %arg1, %c0_i32_27 : i32
    %47 = arith.extui %46 : i1 to i32
    %c0_i32_28 = arith.constant 0 : i32
    %48 = arith.cmpi ne, %47, %c0_i32_28 : i32
    scf.if %48 {
      %c0_29 = arith.constant 0 : index
      %c0_30 = arith.constant 0 : index
      %c0_31 = arith.constant 0 : index
      %c0_32 = arith.constant 0 : index
      %49 = vector.load %arg4[%c0_29, %c0_30, %c0_31, %c0_32] : memref<1x2x8x128xf32, #tpu.memory_space<vmem>>, vector<1x1x8x128xf32>
      %50 = vector.shape_cast %49 : vector<1x1x8x128xf32> to vector<8x128xf32>
      %cst_33 = arith.constant dense<0.000000e+00> : vector<8xf32>
      %51 = vector.multi_reduction <add>, %50, %cst_33 [1] : vector<8x128xf32> to vector<8xf32>
      %52 = vector.shape_cast %51 : vector<8xf32> to vector<8x1xf32>
      %c0_34 = arith.constant 0 : index
      %c1_35 = arith.constant 1 : index
      %c0_36 = arith.constant 0 : index
      %c0_37 = arith.constant 0 : index
      %53 = vector.load %arg4[%c0_34, %c1_35, %c0_36, %c0_37] : memref<1x2x8x128xf32, #tpu.memory_space<vmem>>, vector<1x1x8x128xf32>
      %54 = vector.shape_cast %53 : vector<1x1x8x128xf32> to vector<8x128xf32>
      %cst_38 = arith.constant dense<0.000000e+00> : vector<8xf32>
      %55 = vector.multi_reduction <add>, %54, %cst_38 [1] : vector<8x128xf32> to vector<8xf32>
      %56 = vector.shape_cast %55 : vector<8xf32> to vector<8x1xf32>
      %cst_39 = arith.constant dense<0.000000e+00> : vector<1xf32>
      %57 = vector.multi_reduction <add>, %52, %cst_39 [0] : vector<8x1xf32> to vector<1xf32>
      %58 = vector.shape_cast %57 : vector<1xf32> to vector<1x1xf32>
      %cst_40 = arith.constant dense<0.000000e+00> : vector<1xf32>
      %59 = vector.multi_reduction <add>, %56, %cst_40 [0] : vector<8x1xf32> to vector<1xf32>
      %60 = vector.shape_cast %59 : vector<1xf32> to vector<1x1xf32>
      %61 = vector.shape_cast %58 : vector<1x1xf32> to vector<1x1xf32>
      %62 = vector.broadcast %61 : vector<1x1xf32> to vector<8x128xf32>
      %c0_41 = arith.constant 0 : index
      %c0_42 = arith.constant 0 : index
      %c0_43 = arith.constant 0 : index
      %c0_44 = arith.constant 0 : index
      %63 = vector.load %arg4[%c0_41, %c0_42, %c0_43, %c0_44] : memref<1x2x8x128xf32, #tpu.memory_space<vmem>>, vector<1x1x8x128xf32>
      %64 = vector.shape_cast %63 : vector<1x1x8x128xf32> to vector<8x128xf32>
      %65 = vector.shape_cast %62 : vector<8x128xf32> to vector<1x1x8x128xf32>
      tpu.vector_store %arg4[%c0_41, %c0_42, %c0_43, %c0_44], %65 {strides = array<i32>} : memref<1x2x8x128xf32, #tpu.memory_space<vmem>>, vector<1x1x8x128xf32>,
      %66 = vector.shape_cast %60 : vector<1x1xf32> to vector<1x1xf32>
      %67 = vector.broadcast %66 : vector<1x1xf32> to vector<8x128xf32>
      %c0_45 = arith.constant 0 : index
      %c1_46 = arith.constant 1 : index
      %c0_47 = arith.constant 0 : index
      %c0_48 = arith.constant 0 : index
      %68 = vector.load %arg4[%c0_45, %c1_46, %c0_47, %c0_48] : memref<1x2x8x128xf32, #tpu.memory_space<vmem>>, vector<1x1x8x128xf32>
      %69 = vector.shape_cast %68 : vector<1x1x8x128xf32> to vector<8x128xf32>
      %70 = vector.shape_cast %67 : vector<8x128xf32> to vector<1x1x8x128xf32>
      tpu.vector_store %arg4[%c0_45, %c1_46, %c0_47, %c0_48], %70 {strides = array<i32>} : memref<1x2x8x128xf32, #tpu.memory_space<vmem>>, vector<1x1x8x128xf32>,
    } else {
    }
    return
  }
  func.func @transform_0(%arg0: i32, %arg1: i32) -> (i32, i32) {
    %c1_i32 = arith.constant 1 : i32
    %0 = arith.muli %arg0, %c1_i32 : i32
    %1 = arith.addi %0, %arg1 : i32
    %c0_i32 = arith.constant 0 : i32
    %2 = arith.minsi %1, %c0_i32 : i32
    %c0_i32_0 = arith.constant 0 : i32
    %c0_i32_1 = arith.constant 0 : i32
    return %2, %c0_i32_0 : i32, i32
  }
  func.func @transform_1(%arg0: i32, %arg1: i32) -> (i32, i32) {
    %c1_i32 = arith.constant 1 : i32
    %0 = arith.muli %arg0, %c1_i32 : i32
    %1 = arith.addi %0, %arg1 : i32
    %c0_i32 = arith.constant 0 : i32
    %2 = arith.minsi %1, %c0_i32 : i32
    %c0_i32_0 = arith.constant 0 : i32
    %c0_i32_1 = arith.constant 0 : i32
    return %2, %c0_i32_0 : i32, i32
  }
  func.func @transform_2(%arg0: i32, %arg1: i32) -> (i32, i32, i32, i32) {
    %c0_i32 = arith.constant 0 : i32
    %c0_i32_0 = arith.constant 0 : i32
    %c0_i32_1 = arith.constant 0 : i32
    %c0_i32_2 = arith.constant 0 : i32
    return %arg0, %c0_i32, %c0_i32_0, %c0_i32_1 : i32, i32, i32, i32
  }
}

</mosaic_0001>

<bundles_post_ra>
// kernel: tpu_custom_call.1
= control target key start
LH: loop header
LB: loop body
LE: loop exit
PB: predicated region body
PF: predicated region fallthrough
CT: control target
= control target key end

     0   :  { %7 = vsyncpa [#allocation3], 0  ;;  %s304_s0 = inlined_call_operand.hbm [shape: f32[16,128], index: 0, kind: input, shape index: {}]   ;;  %s305_s1 = inlined_call_operand.hbm [shape: f32[16,128], index: 1, kind: input, shape index: {}]   ;;  %s306_s2 = inlined_call_operand.hbm [shape: f32[1,2,8,128], index: 2, kind: output, shape index: {}]  }
   0x1   :  { %8 = vsyncpa [#allocation6], 0 }
   0x2   :  { %9 = vsyncpa [#allocation4], 0  ;;  %s238_s9 = smov [#allocation2]   ;;  %s166_s13 = scalar_lea.hbm %s304_s0, 256 }
   0x3   :  { %s21_s10 = sshll.u32 %s238_s9, 4  ;;  %p167_p0 = scmp.ne.s32.totalorder %s304_s0, %s166_s13  ;;  %s22_s10 = int_to_ptr.vmem [resolvable:$true] %s21_s10 }
   0x4   :  { %p170_p1 = scmp.lt.u32.totalorder %s166_s13, %s304_s0 }
   0x6   :  { %p172_p2 = pnand %p170_p1, %p167_p0 }
   0x8   :  { %175 = shalt.err (!%p172_p2)
}
   0x9   :  { %s176_s18 = scalar_lea.vmem %s22_s10, 256  ;;  %p181_p4 = scmp.lt.s32.totalorder %s22_s10, %s22_s10 }
   0xa   :  { %p177_p3 = scmp.ne.s32.totalorder %s22_s10, %s176_s18  ;;  %p182_p5 = scmp.lt.s32.totalorder %s176_s18, %s176_s18 }
   0xc   :  { %p183_p6 = por %p182_p5, %p181_p4 }
   0xe   :  { %p184_p7 = pnand %p183_p6, %p177_p3 }
  0x10   :  { %187 = shalt.err (!%p184_p7)
}
  0x11   :  { %s239_s19 = smov 128   ;;  %s240_s20 = smov 8  }
  0x12   :  { %27 = dma.hbm_to_vmem [thread:$0]  %s304_s0, 256, %s22_s10, [#allocation3], %s239_s19, %s239_s19, %s240_s20  }
  0x13   :  { %s241_s23 = smov [#allocation5]   ;;  %s188_s27 = scalar_lea.hbm %s305_s1, 256 }
  0x14   :  { %s39_s24 = sshll.u32 %s241_s23, 4  ;;  %p189_p8 = scmp.ne.s32.totalorder %s305_s1, %s188_s27  ;;  %s40_s24 = int_to_ptr.vmem [resolvable:$true] %s39_s24 }
  0x15   :  { %p192_p9 = scmp.lt.u32.totalorder %s188_s27, %s305_s1 }
  0x17   :  { %p194_p10 = pnand %p192_p9, %p189_p8 }
  0x19   :  { %197 = shalt.err (!%p194_p10)
}
  0x1a   :  { %s198_s4 = scalar_lea.vmem %s40_s24, 256  ;;  %p203_p12 = scmp.lt.s32.totalorder %s40_s24, %s40_s24 }
  0x1b   :  { %p199_p11 = scmp.ne.s32.totalorder %s40_s24, %s198_s4  ;;  %p204_p13 = scmp.lt.s32.totalorder %s198_s4, %s198_s4 }
  0x1d   :  { %p205_p0 = por %p204_p13, %p203_p12 }
  0x1f   :  { %p206_p1 = pnand %p205_p0, %p199_p11 }
  0x21   :  { %209 = shalt.err (!%p206_p1)
}
  0x22   :  { %45 = dma.hbm_to_vmem [thread:$0]  %s305_s1, 256, %s40_s24, [#allocation6], %s239_s19, %s239_s19, %s240_s20  }
  0x23   :  { %232 = dma.done.wait [#allocation3], 256  }
  0x24   :  { %233 = vsyncadd [#allocation3], 4294967040 }
  0x25   :  { %234 = dma.done.wait [#allocation6], 256  }
  0x26   :  { %235 = vsyncadd [#allocation6], 4294967040  ;;  %v66_v0 = vld [vmem:[#allocation2] sm:$0xff]  ;;  %v67_v1 = vld [vmem:[#allocation2 + $0x8] sm:$0xff]  ;;  %v242_v24 = vmov 0.0   ;;  %s243_s1 = smov [#allocation7]  }
  0x27   :  { %158 = vlog2.f32 %v66_v0  ;;  %v78_v2 = vsub.f32 1.0, %v66_v0  ;;  %v79_v3 = vsub.f32 1.0, %v67_v1  ;;  %v68_v15 = vld [vmem:[#allocation5] sm:$0xff]  ;;  %v69_v17 = vld [vmem:[#allocation5 + $0x8] sm:$0xff]  ;;  %s135_s6 = sshll.u32 %s243_s1, 4  ;;  %s136_s6 = int_to_ptr.vmem [resolvable:$true] %s135_s6 }
  0x28   :  { %160 = vlog2.f32 %v67_v1  ;;  %vm70_vm0 = vcmp.gt.f32.partialorder %v68_v15, -0.5  ;;  %vm71_vm1 = vcmp.gt.f32.partialorder %v69_v17, -0.5  ;;  %s210_s7 = scalar_lea.vmem %s136_s6, 256  ;;  %p215_p3 = scmp.lt.s32.totalorder %s136_s6, %s136_s6 }
  0x29   :  { %162 = vlog2.f32 %v78_v2  ;;  %v94_v25 = vsel %vm70_vm0, 1.0, %v242_v24  ;;  %v95_v26 = vsel %vm71_vm1, 1.0, %v242_v24  ;;  %p211_p2 = scmp.ne.s32.totalorder %s136_s6, %s210_s7  ;;  %p216_p4 = scmp.lt.s32.totalorder %s210_s7, %s210_s7 }
  0x2a   :  { %164 = vlog2.f32 %v79_v3  ;;  %v98_v30 = vadd.f32 %v95_v26, %v94_v25 }
  0x2b   :  { %p217_p5 = por %p216_p4, %p215_p3 }
  0x2d   :  { %p218_p6 = pnand %p217_p5, %p211_p2 }
  0x31   :  { %v159_v4 = vpop.eup %158 }
  0x32   :  { %v161_v5 = vpop.eup %160  ;;  %v73_v6 = vmul.f32 0.6931472, %v159_v4 }
  0x33   :  { %v163_v7 = vpop.eup %162  ;;  %v75_v8 = vmul.f32 0.6931472, %v161_v5 }
  0x34   :  { %v165_v9 = vpop.eup %164  ;;  %v76_v10 = vmax.f32 %v73_v6, -100.0  ;;  %v81_v11 = vmul.f32 0.6931472, %v163_v7 }
  0x35   :  { %v77_v12 = vmax.f32 %v75_v8, -100.0  ;;  %v83_v13 = vmul.f32 0.6931472, %v165_v9 }
  0x36   :  { %v84_v14 = vmax.f32 %v81_v11, -100.0 }
  0x37   :  { %v85_v16 = vmax.f32 %v83_v13, -100.0 }
  0x38   :  { %v86_v18 = vsub.f32 %v76_v10, %v84_v14 }
  0x39   :  { %v87_v19 = vsub.f32 %v77_v12, %v85_v16 }
  0x3a   :  { %v88_v20 = vmul.f32 %v86_v18, %v68_v15 }
  0x3b   :  { %v89_v21 = vmul.f32 %v87_v19, %v69_v17 }
  0x3c   :  { %v90_v22 = vadd.f32 %v88_v20, %v84_v14 }
  0x3d   :  { %v91_v23 = vadd.f32 %v89_v21, %v85_v16 }
  0x3e   :  { %v92_v27 = vsel %vm70_vm0, %v90_v22, 0.0 }
  0x3f   :  { %v93_v28 = vsel %vm71_vm1, %v91_v23, 0.0 }
  0x40   :  { %v96_v29 = vadd.f32 %v93_v28, %v92_v27 }
  0x42   :  { %111 = vadd.xlane.f32.xlu0 %v96_v29 }
  0x46   :  { %114 = vadd.xlane.f32.xlu0 %v98_v30 }
  0xcf   :  { %v112_v31 = vpop.xlane.xlu0 %111 }
  0xd0   :  { %v116_v32 = vrot.slane %v112_v31, 4 }
  0xd2   :  { %v117_v33 = vadd.f32 %v116_v32, %v112_v31 }
  0xd3   :  { %v115_v34 = vpop.xlane.xlu0 %114 }
  0xd4   :  { %v118_v35 = vrot.slane %v117_v33, 2  ;;  %v122_v36 = vrot.slane %v115_v34, 4 }
  0xd6   :  { %v119_v37 = vadd.f32 %v118_v35, %v117_v33  ;;  %v123_v38 = vadd.f32 %v122_v36, %v115_v34 }
  0xd8   :  { %v120_v39 = vrot.slane %v119_v37, 1  ;;  %v124_v40 = vrot.slane %v123_v38, 2 }
  0xda   :  { %v121_v41 = vadd.f32 %v120_v39, %v119_v37  ;;  %v125_v42 = vadd.f32 %v124_v40, %v123_v38 }
  0xdc   :  { %128 = vst [vmem:[#allocation7] sm:$0xff] %v121_v41  ;;  %v126_v43 = vrot.slane %v125_v42, 1 }
  0xde   :  { %v127_v44 = vadd.f32 %v126_v43, %v125_v42 }
  0xe0   :  { %129 = vst [vmem:[#allocation7 + $0x8] sm:$0xff] %v127_v44 }
  0xe1   :  { %221 = shalt.err (!%p218_p6)
}
  0xe2   :  { %s222_s10 = scalar_lea.hbm %s306_s2, 256 }
  0xe3   :  { %p223_p7 = scmp.ne.s32.totalorder %s306_s2, %s222_s10  ;;  %p226_p8 = scmp.lt.u32.totalorder %s222_s10, %s306_s2 }
  0xe5   :  { %p228_p9 = pnand %p226_p8, %p223_p7 }
  0xe7   :  { %231 = shalt.err (!%p228_p9)
}
  0xe8   :  { %141 = dma.vmem_to_hbm [thread:$0]  %s136_s6, 256, %s306_s2, [#allocation4], %s239_s19, %s239_s19, %s240_s20  }
  0xe9   :  { %236 = dma.done.wait [#allocation4], 256  }
  0xea   :  { %237 = vsyncadd [#allocation4], 4294967040 }
  0xeb   :  { %145 = vsyncpa [#allocation3], 1 }
  0xec   :  { %146 = vsyncpa [#allocation6], 1 }
  0xed   :  { %147 = vsyncpa [#allocation4], 1 }

</bundles_post_ra>
